<compile_context>
chip_gen: v5e
topology: v5e:2x2
jax: 0.10.0
libtpu: 0.0.40
codegen_flags: <defaults>
</compile_context>

<pallas_src>
import math
import numpy as np

import jax
import jax.numpy as jnp
from jax.experimental import pallas as pl
from jax.experimental.pallas import tpu as pltpu


# ---------------------------------------------------------------------------
# Positional encoding, replicating get_positional() exactly (including the
# 2*(i+1)/dim exponent on the cosine terms).
# ---------------------------------------------------------------------------
def get_positional_np(seq_len, dim):
    assert dim % 2 == 0, "hidden size must be even (pe indexes [pos, i+1])"
    pe = np.zeros((seq_len, dim), dtype=np.float32)
    normalizer = 1.0 / (1.0 + math.exp(-1))
    for pos in range(seq_len):
        for i in range(0, dim, 2):
            pe[pos, i] = normalizer * math.sin(pos / 10000 ** (2 * i / dim))
            pe[pos, i + 1] = normalizer * math.cos(pos / 10000 ** (2 * (i + 1) / dim))
    return pe  # (seq_len, dim)


# ---------------------------------------------------------------------------
# Pallas kernel: one batch-tile of `bb` images per grid step.
#   patches block : (bb, P, D_in) -> flattened to (bb*P, D_in), one big matmul
#   cls_emb       : (4, H) f32    -> precomputed in wrapper, broadcast to rows 0:4
#   out block     : (bb, 4+P, H)  -> cls rows then patch rows (+ pe)
# Matmuls accumulate in f32 (preferred_element_type); bias / ReLU / pe add
# stay in f32 even when inputs are bf16.
# ---------------------------------------------------------------------------
def encoder_kernel(patch_ref, cls_emb_ref, w1_ref, b1_ref, w2_ref, b2_ref,
                   pe_ref, out_ref):
    bb, P, D_in = patch_ref.shape
    hid = w1_ref.shape[1]

    # ---- patch rows: one (bb*P, D_in) @ (D_in, hid) matmul ----
    xp = patch_ref[...].reshape(bb * P, D_in)
    h = jnp.dot(xp, w1_ref[...], preferred_element_type=jnp.float32) + b1_ref[...]
    h = jnp.maximum(h, 0.0)
    yp = jnp.dot(h.astype(w2_ref.dtype), w2_ref[...],
                 preferred_element_type=jnp.float32) + b2_ref[...]
    yp = yp.reshape(bb, P, hid) + pe_ref[...][None]          # pe only on patches

    # ---- cls rows: batch-invariant, precomputed in the wrapper ----
    yc = jnp.broadcast_to(cls_emb_ref[...][None], (bb, 4, hid))

    # Two row-range stores into the VMEM out block (see header for why this
    # was kept instead of a single concatenated store).
    out_ref[:, 0:4, :] = yc.astype(out_ref.dtype)
    out_ref[:, 4:, :] = yp.astype(out_ref.dtype)


def _round_up(x, m):
    return -(-x // m) * m


def _per_elem_vmem_bytes(P, D_in, T, hid, compute_dtype, out_dtype):
    """Double-buffered VMEM bytes per batch element for the pipelined patch
    input block and output block, including (8,128) tile padding (bf16 packs
    16 rows per sublane tile)."""
    in_item = jnp.dtype(compute_dtype).itemsize
    out_item = jnp.dtype(out_dtype).itemsize
    in_sub = 32 // in_item       # 8 rows (f32) / 16 rows (bf16)
    out_sub = 32 // out_item
    patch = _round_up(P, in_sub) * _round_up(D_in, 128) * in_item
    out = _round_up(T, out_sub) * _round_up(hid, 128) * out_item
    return 2 * (patch + out)     # x2: double-buffered pipeline


def encoder_pallas(patches, cls_emb, w1, b1, w2, b2, pe, *, batch_tile,
                   out_dtype=jnp.float32, vmem_limit_bytes=None):
    B_pad, P, D_in = patches.shape
    hid = w1.shape[1]
    T = 4 + P
    bb = batch_tile
    assert B_pad % bb == 0

    return pl.pallas_call(
        encoder_kernel,
        out_shape=jax.ShapeDtypeStruct((B_pad, T, hid), out_dtype),
        grid_spec=pltpu.PrefetchScalarGridSpec(
            num_scalar_prefetch=0,
            grid=(B_pad // bb,),
            in_specs=[
                pl.BlockSpec((bb, P, D_in), lambda i: (i, 0, 0)),   # patches
                pl.BlockSpec((4, hid), lambda i: (0, 0)),           # cls embedding (f32)
                pl.BlockSpec((D_in, hid), lambda i: (0, 0)),        # W1
                pl.BlockSpec((1, hid), lambda i: (0, 0)),           # b1 (f32)
                pl.BlockSpec((hid, hid), lambda i: (0, 0)),         # W2
                pl.BlockSpec((1, hid), lambda i: (0, 0)),           # b2 (f32)
                pl.BlockSpec((P, hid), lambda i: (0, 0)),           # pe (f32)
            ],
            out_specs=pl.BlockSpec((bb, T, hid), lambda i: (i, 0, 0)),
        ),
        # "parallel" batch-tile axis -> shards across both TensorCores on v7x
        # (the wrapper guarantees >= 2 grid steps whenever B >= 2).
        compiler_params=pltpu.CompilerParams(
            dimension_semantics=("parallel",),
            vmem_limit_bytes=vmem_limit_bytes,
        ),
    )(patches, cls_emb, w1, b1, w2, b2, pe)


# ---------------------------------------------------------------------------
# Full Encoder forward (glue + kernel).
# ---------------------------------------------------------------------------
def encoder_forward(x, params, *, compute_dtype=jnp.float32,
                    out_dtype=jnp.float32, batch_tile=256,
                    vmem_budget_bytes=12 * 2**20, vmem_limit_bytes=None):
    """x: (B, C, H, W) float32, NCHW — same as the PyTorch module.

    compute_dtype=jnp.bfloat16 enables the bf16 MXU path (valid on v5e, v6e
    and v7x — the MXU is bf16-native on all of them); accumulation and the
    bias/ReLU/pe epilogue stay f32.  out_dtype=jnp.bfloat16 halves output HBM
    traffic if downstream tolerates it (default f32 matches the PyTorch module).
    """
    B, C, H, W = x.shape
    ph, pw = 4, 4
    n_horiz, n_vert = H // ph, W // pw
    n_patches = n_horiz * n_vert
    D_in = C * ph * pw
    hid = params["w1"].shape[1]
    T = 4 + n_patches

    # patchify: reshape(B,C,nh,ph,nv,pw).permute(0,2,4,3,5,1).reshape(B,P,D_in)
    # (the dtype cast fuses into the XLA transpose).
    patches = x.reshape(B, C, n_horiz, ph, n_vert, pw)
    patches = jnp.transpose(patches, (0, 2, 4, 3, 5, 1))
    patches = patches.reshape(B, n_patches, D_in).astype(compute_dtype)

    # Batch tiling: VMEM-capped so the double-buffered in/out blocks fit the
    # scoped-VMEM defaults on every generation; then forced to >= 2 grid steps
    # when B >= 2 so v7x can shard the "parallel" axis across its 2 TCs.
    per_elem = _per_elem_vmem_bytes(n_patches, D_in, T, hid, compute_dtype, out_dtype)
    bb_cap = max(1, int(vmem_budget_bytes // per_elem))
    bb = max(1, min(batch_tile, bb_cap, B))
    if B >= 2:
        bb = min(bb, -(-B // 2))
    n_tiles = -(-B // bb)
    B_pad = n_tiles * bb
    if B_pad != B:
        # Padded rows compute garbage through the MLP and are sliced off below.
        patches = jnp.pad(patches, ((0, B_pad - B), (0, 0), (0, 0)))

    b1 = params["b1"].astype(jnp.float32)
    b2 = params["b2"].astype(jnp.float32)
    pe = params["pe"].astype(jnp.float32)                    # (n_patches, hid)
    w1 = params["w1"].astype(compute_dtype)
    w2 = params["w2"].astype(compute_dtype)

    # Batch-invariant cls embedding: computed once here (tiny), not per tile.
    prec = jax.lax.Precision.HIGHEST
    cls_tok = params["cls_token"].reshape(4, D_in).astype(compute_dtype)
    hc = jnp.maximum(
        jnp.dot(cls_tok, w1, preferred_element_type=jnp.float32, precision=prec) + b1,
        0.0)
    cls_emb = jnp.dot(hc.astype(compute_dtype), w2,
                      preferred_element_type=jnp.float32, precision=prec) + b2

    out = encoder_pallas(patches, cls_emb, w1, b1, w2, b2, pe,
                         batch_tile=bb, out_dtype=out_dtype,
                         vmem_limit_bytes=vmem_limit_bytes)
    return out[:B] if B_pad != B else out                    # (B, 4+n_patches, hid)


def encoder_reference(x, params):
    """Pure-JAX f32 reference mirroring the PyTorch forward exactly."""
    B, C, H, W = x.shape
    ph, pw = 4, 4
    n_horiz, n_vert = H // ph, W // pw
    n_patches = n_horiz * n_vert
    D_in = C * ph * pw
    prec = jax.lax.Precision.HIGHEST

    patches = x.reshape(B, C, n_horiz, ph, n_vert, pw)
    patches = jnp.transpose(patches, (0, 2, 4, 3, 5, 1)).reshape(B, n_patches, D_in)

    def mlp(t):
        h = jnp.maximum(jnp.dot(t, params["w1"], precision=prec) + params["b1"], 0.0)
        return jnp.dot(h, params["w2"], precision=prec) + params["b2"]

    cls = jnp.broadcast_to(params["cls_token"], (B, 4, D_in))
    x_emb = mlp(patches) + params["pe"][None]                # (B, P, H)
    cls_emb = mlp(cls)                                       # (B, 4, H)
    return jnp.concatenate([cls_emb, x_emb], axis=1)


if __name__ == "__main__":
    # Small shapes: B=2, C=4, img 16x16, hidden=32  ->  T = 4 + 16 = 20, D_in = 64
    B, C, IMG, HID = 2, 4, 16, 32
    ph = pw = 4
    n_patches = (IMG // ph) * (IMG // pw)
    D_in = C * ph * pw

    key = jax.random.PRNGKey(0)
    k_x, k_w1, k_b1, k_w2, k_b2, k_cls = jax.random.split(key, 6)

    x = jax.random.normal(k_x, (B, C, IMG, IMG), dtype=jnp.float32)

    params = {
        "w1": jax.random.normal(k_w1, (D_in, HID), jnp.float32) * (1.0 / math.sqrt(D_in)),
        "b1": jax.random.normal(k_b1, (1, HID), jnp.float32) * 0.01,
        "w2": jax.random.normal(k_w2, (HID, HID), jnp.float32) * (1.0 / math.sqrt(HID)),
        "b2": jax.random.normal(k_b2, (1, HID), jnp.float32) * 0.01,
        "cls_token": jax.random.normal(k_cls, (1, 4, D_in), jnp.float32),
        "pe": jnp.asarray(get_positional_np(n_patches, HID)),
    }

    ref = jax.block_until_ready(encoder_reference(x, params))

    # f32 path.  Tolerance accounts for possible MXU f32-pass-count differences
    # between the in-kernel matmul and the XLA reference; real layout/indexing
    # bugs would show up as O(1) errors.
    out = jax.block_until_ready(encoder_forward(x, params))
    assert out.shape == (B, 4 + n_patches, HID), out.shape
    assert out.dtype == jnp.float32, out.dtype
    err_f32 = float(jnp.max(jnp.abs(out - ref)))
    assert jnp.allclose(out, ref, atol=2e-2, rtol=2e-2), err_f32

    # bf16 MXU path (valid on v5e/v6e/v7x) with bf16 output — loose tolerance.
    out_bf16 = jax.block_until_ready(
        encoder_forward(x, params, compute_dtype=jnp.bfloat16,
                        out_dtype=jnp.bfloat16))
    assert out_bf16.shape == (B, 4 + n_patches, HID), out_bf16.shape
    assert out_bf16.dtype == jnp.bfloat16, out_bf16.dtype
    err_bf16 = float(jnp.max(jnp.abs(out_bf16.astype(jnp.float32) - ref)))
    assert jnp.allclose(out_bf16.astype(jnp.float32), ref, atol=2e-1, rtol=2e-1), err_bf16

    print("KERNEL_OK")
</pallas_src>

<mosaic_0001>
module attributes {stable_mosaic.version = 11 : i64} {
  func.func @encoder_kernel(%arg0: i32, %arg1: memref<1x16x64xf32, #tpu.memory_space<vmem>>, %arg2: memref<4x32xf32, #tpu.memory_space<vmem>>, %arg3: memref<64x32xf32, #tpu.memory_space<vmem>>, %arg4: memref<1x32xf32, #tpu.memory_space<vmem>>, %arg5: memref<32x32xf32, #tpu.memory_space<vmem>>, %arg6: memref<1x32xf32, #tpu.memory_space<vmem>>, %arg7: memref<16x32xf32, #tpu.memory_space<vmem>>, %arg8: memref<1x20x32xf32, #tpu.memory_space<vmem>>) attributes {dimension_semantics = [#tpu.dimension_semantics<parallel>], iteration_bounds = array<i64: 2>, scalar_prefetch = 0 : i64, scratch_operands = 0 : i64, tpu.core_type = #tpu.core_type<tc>, window_params = [{transform_indices = @transform_0, window_bounds = array<i64: 1, 16, 64>}, {pipeline_mode = #tpu.pipeline_mode<synchronous>, transform_indices = @transform_1, window_bounds = array<i64: 4, 32>}, {pipeline_mode = #tpu.pipeline_mode<synchronous>, transform_indices = @transform_2, window_bounds = array<i64: 64, 32>}, {pipeline_mode = #tpu.pipeline_mode<synchronous>, transform_indices = @transform_3, window_bounds = array<i64: 1, 32>}, {pipeline_mode = #tpu.pipeline_mode<synchronous>, transform_indices = @transform_4, window_bounds = array<i64: 32, 32>}, {pipeline_mode = #tpu.pipeline_mode<synchronous>, transform_indices = @transform_5, window_bounds = array<i64: 1, 32>}, {pipeline_mode = #tpu.pipeline_mode<synchronous>, transform_indices = @transform_6, window_bounds = array<i64: 16, 32>}, {transform_indices = @transform_7, window_bounds = array<i64: 1, 20, 32>}]} {
    %c0 = arith.constant 0 : index
    %c0_0 = arith.constant 0 : index
    %c0_1 = arith.constant 0 : index
    %0 = vector.load %arg1[%c0, %c0_0, %c0_1] : memref<1x16x64xf32, #tpu.memory_space<vmem>>, vector<1x16x64xf32>
    %1 = vector.shape_cast %0 : vector<1x16x64xf32> to vector<16x64xf32>
    %c0_2 = arith.constant 0 : index
    %c0_3 = arith.constant 0 : index
    %2 = vector.load %arg3[%c0_2, %c0_3] : memref<64x32xf32, #tpu.memory_space<vmem>>, vector<64x32xf32>
    %cst = arith.constant dense<0.000000e+00> : vector<16x32xf32>
    %3 = tpu.matmul %1, %2, %cst {dimension_numbers = #tpu.dot_dimension_numbers<[1], [0], [0], [1], [0, 0, 1, 1], [], []>} : vector<16x64xf32>, vector<64x32xf32>, vector<16x32xf32> -> vector<16x32xf32>
    %c0_4 = arith.constant 0 : index
    %c0_5 = arith.constant 0 : index
    %4 = vector.load %arg4[%c0_4, %c0_5] : memref<1x32xf32, #tpu.memory_space<vmem>>, vector<1x32xf32>
    %5 = vector.broadcast %4 : vector<1x32xf32> to vector<16x32xf32>
    %6 = arith.addf %3, %5 : vector<16x32xf32>
    %cst_6 = arith.constant 0.000000e+00 : f32
    %7 = vector.broadcast %cst_6 : f32 to vector<16x32xf32>
    %8 = arith.maximumf %6, %7 : vector<16x32xf32>
    %c0_7 = arith.constant 0 : index
    %c0_8 = arith.constant 0 : index
    %9 = vector.load %arg5[%c0_7, %c0_8] : memref<32x32xf32, #tpu.memory_space<vmem>>, vector<32x32xf32>
    %cst_9 = arith.constant dense<0.000000e+00> : vector<16x32xf32>
    %10 = tpu.matmul %8, %9, %cst_9 {dimension_numbers = #tpu.dot_dimension_numbers<[1], [0], [0], [1], [0, 0, 1, 1], [], []>} : vector<16x32xf32>, vector<32x32xf32>, vector<16x32xf32> -> vector<16x32xf32>
    %c0_10 = arith.constant 0 : index
    %c0_11 = arith.constant 0 : index
    %11 = vector.load %arg6[%c0_10, %c0_11] : memref<1x32xf32, #tpu.memory_space<vmem>>, vector<1x32xf32>
    %12 = vector.broadcast %11 : vector<1x32xf32> to vector<16x32xf32>
    %13 = arith.addf %10, %12 : vector<16x32xf32>
    %14 = vector.shape_cast %13 : vector<16x32xf32> to vector<1x16x32xf32>
    %c0_12 = arith.constant 0 : index
    %c0_13 = arith.constant 0 : index
    %15 = vector.load %arg7[%c0_12, %c0_13] : memref<16x32xf32, #tpu.memory_space<vmem>>, vector<16x32xf32>
    %16 = vector.shape_cast %15 : vector<16x32xf32> to vector<1x16x32xf32>
    %17 = arith.addf %14, %16 : vector<1x16x32xf32>
    %c0_14 = arith.constant 0 : index
    %c0_15 = arith.constant 0 : index
    %18 = vector.load %arg2[%c0_14, %c0_15] : memref<4x32xf32, #tpu.memory_space<vmem>>, vector<4x32xf32>
    %19 = vector.shape_cast %18 : vector<4x32xf32> to vector<1x4x32xf32>
    %c0_16 = arith.constant 0 : index
    %c0_17 = arith.constant 0 : index
    %c0_18 = arith.constant 0 : index
    %20 = vector.load %arg8[%c0_16, %c0_17, %c0_18] : memref<1x20x32xf32, #tpu.memory_space<vmem>>, vector<1x4x32xf32>
    tpu.vector_store %arg8[%c0_16, %c0_17, %c0_18], %19 {strides = array<i32>} : memref<1x20x32xf32, #tpu.memory_space<vmem>>, vector<1x4x32xf32>,
    %c0_19 = arith.constant 0 : index
    %c4 = arith.constant 4 : index
    %c0_20 = arith.constant 0 : index
    %21 = vector.load %arg8[%c0_19, %c4, %c0_20] : memref<1x20x32xf32, #tpu.memory_space<vmem>>, vector<1x16x32xf32>
    tpu.vector_store %arg8[%c0_19, %c4, %c0_20], %17 {strides = array<i32>} : memref<1x20x32xf32, #tpu.memory_space<vmem>>, vector<1x16x32xf32>,
    return
  }
  func.func @transform_0(%arg0: i32) -> (i32, i32, i32) {
    %c0_i32 = arith.constant 0 : i32
    %c0_i32_0 = arith.constant 0 : i32
    %c0_i32_1 = arith.constant 0 : i32
    return %arg0, %c0_i32, %c0_i32_0 : i32, i32, i32
  }
  func.func @transform_1(%arg0: i32) -> (i32, i32) {
    %c0_i32 = arith.constant 0 : i32
    %c0_i32_0 = arith.constant 0 : i32
    %c0_i32_1 = arith.constant 0 : i32
    return %c0_i32, %c0_i32_0 : i32, i32
  }
  func.func @transform_2(%arg0: i32) -> (i32, i32) {
    %c0_i32 = arith.constant 0 : i32
    %c0_i32_0 = arith.constant 0 : i32
    %c0_i32_1 = arith.constant 0 : i32
    return %c0_i32, %c0_i32_0 : i32, i32
  }
  func.func @transform_3(%arg0: i32) -> (i32, i32) {
    %c0_i32 = arith.constant 0 : i32
    %c0_i32_0 = arith.constant 0 : i32
    %c0_i32_1 = arith.constant 0 : i32
    return %c0_i32, %c0_i32_0 : i32, i32
  }
  func.func @transform_4(%arg0: i32) -> (i32, i32) {
    %c0_i32 = arith.constant 0 : i32
    %c0_i32_0 = arith.constant 0 : i32
    %c0_i32_1 = arith.constant 0 : i32
    return %c0_i32, %c0_i32_0 : i32, i32
  }
  func.func @transform_5(%arg0: i32) -> (i32, i32) {
    %c0_i32 = arith.constant 0 : i32
    %c0_i32_0 = arith.constant 0 : i32
    %c0_i32_1 = arith.constant 0 : i32
    return %c0_i32, %c0_i32_0 : i32, i32
  }
  func.func @transform_6(%arg0: i32) -> (i32, i32) {
    %c0_i32 = arith.constant 0 : i32
    %c0_i32_0 = arith.constant 0 : i32
    %c0_i32_1 = arith.constant 0 : i32
    return %c0_i32, %c0_i32_0 : i32, i32
  }
  func.func @transform_7(%arg0: i32) -> (i32, i32, i32) {
    %c0_i32 = arith.constant 0 : i32
    %c0_i32_0 = arith.constant 0 : i32
    %c0_i32_1 = arith.constant 0 : i32
    return %arg0, %c0_i32, %c0_i32_0 : i32, i32, i32
  }
}

</mosaic_0001>

<bundles_post_ra>
// kernel: tpu_custom_call.1
= control target key start
LH: loop header
LB: loop body
LE: loop exit
PB: predicated region body
PF: predicated region fallthrough
CT: control target
= control target key end

     0   :  { %s509_s24 = smov 0   ;;  %s586_s0 = inlined_call_operand.vmem [shape: f32[2,16,64], index: 0, kind: input, shape index: {}]   ;;  %s587_s1 = inlined_call_operand.vmem [shape: f32[4,32], index: 1, kind: input, shape index: {}]   ;;  %s588_s2 = inlined_call_operand.vmem [shape: f32[64,32], index: 2, kind: input, shape index: {}]   ;;  %s589_s3 = inlined_call_operand.vmem [shape: f32[1,32], index: 3, kind: input, shape index: {}]   ;;  %s590_s4 = inlined_call_operand.vmem [shape: f32[32,32], index: 4, kind: input, shape index: {}]   ;;  %s591_s5 = inlined_call_operand.vmem [shape: f32[1,32], index: 5, kind: input, shape index: {}]   ;;  %s592_s6 = inlined_call_operand.vmem [shape: f32[16,32], index: 6, kind: input, shape index: {}]   ;;  %s593_s7 = inlined_call_operand.vmem [shape: f32[2,20,32], index: 7, kind: output, shape index: {}]  }
   0x1 LB: > { %s427_s25 = sadd.s32 4294967295, %s467_s24   ;;  %p431_p0 = scmp.ge.s32.totalorder %s467_s24, 1  ;;  %s467_s24 = sphi %s509_s24, %s17_s24  }
   0x2   : > { %p237_p1 = scmp.lt.s32.totalorder %s467_s24, 3 }
   0x4   : > { %p238_p2 = pnand %p431_p0, %p237_p1 }
   0x5   : > { %p269_p3 = scmp.lt.s32.totalorder (!%p238_p2), %s427_s25, 1 }
   0x6   : > { %241 = sbr.rel (%p238_p2) target bundleno = 296 (0x128), region = 48 }
   0xb   : > { %v288_v0 = vld [vmem:[%s588_s2 + $0x38] sm:$0xff]  ;;  %v287_v1 = vld [vmem:[%s588_s2 + $0x30] sm:$0xff]  ;;  %v286_v2 = vld [vmem:[%s588_s2 + $0x28] sm:$0xff]  ;;  %s595_s25 = smov (!%p269_p3, %s427_s25), 1  ;;  %vm368_vm0 = vcmask 257024   ;;  %vm293_vm1 = vcmask 523264  }
   0xc   : > { %308 = vmatpush.msra.mxu0 %v288_v0  ;;  %442 = vmatpush.msra.mxu2 %v288_v0  ;;  %v328_v3 = vld [vmem:[%s590_s4 + $0x18] sm:$0xff]  ;;  %v285_v4 = vld [vmem:[%s588_s2 + $0x20] sm:$0xff]  ;;  %s450_s13 = smul.u32 24, %s595_s25  ;;  %s441_s21 = sshll.u32 %s595_s25, 4  ;;  %v283_v7 = vld [vmem:[%s588_s2 + $0x10] sm:$0xff]  ;;  %vm333_vm2 = vcmask 261120  }
   0xd   : > { %v367_v5 = vld [vmem:[%s587_s1] sm:$0xf]  ;;  %352 = vmatpush.msra.mxu1 %v328_v3  ;;  %v284_v6 = vld [vmem:[%s588_s2 + $0x18] sm:$0xff]  ;;  %v282_v8 = vld [vmem:[%s588_s2 + $0x8] sm:$0xff]  ;;  %s273_s30 = scalar_lea.vmem %s586_s0, %s441_s21 }
   0xe   : > { %309 = vmatpush.msra.mxu0 %v287_v1  ;;  %443 = vmatpush.msra.mxu2 %v287_v1  ;;  %s541_s20 = scalar_lea.vmem %s593_s7, %s450_s13  ;;  %v281_v9 = vld [vmem:[%s588_s2] sm:$0xff]  ;;  %v280_v11 = vld [vmem:[%s273_s30 + $0x8] sm:$0xff]  ;;  %v327_v12 = vld [vmem:[%s590_s4 + $0x10] sm:$0xff] }
   0xf   : > { %369 = vst.msk [vmem:[%s541_s20] sm:$0xf] %vm368_vm0, %v367_v5  ;;  %v279_v10 = vld [vmem:[%s273_s30] sm:$0xff]  ;;  %353 = vmatpush.msra.mxu1 %v327_v12  ;;  %v326_v13 = vld [vmem:[%s590_s4 + $0x8] sm:$0xff] }
  0x10   : > { %310 = vmatpush.msra.mxu0 %v286_v2  ;;  %444 = vmatpush.msra.mxu2 %v286_v2  ;;  %v325_v14 = vld [vmem:[%s590_s4] sm:$0xff]  ;;  %v364_v28 = vld [vmem:[%s592_s6 + $0x8] sm:$0xff] }
  0x11   : > { %354 = vmatpush.msra.mxu1 %v326_v13  ;;  %v459_v15 = vld [vmem:[%s589_s3] ss:$0 sm:$0xff] }
  0x12   : > { %311 = vmatpush.msra.mxu0 %v285_v4  ;;  %445 = vmatpush.msra.mxu2 %v285_v4  ;;  %v460_v22 = vld [vmem:[%s591_s5] ss:$0 sm:$0xff] }
  0x13   : > { %355 = vmatpush.msra.mxu1 %v325_v14  ;;  %v363_v24 = vld [vmem:[%s592_s6] sm:$0xff] }
  0x14   : > { %312 = vmatpush.msra.mxu0 %v284_v6  ;;  %446 = vmatpush.msra.mxu2 %v284_v6 }
  0x16   : > { %313 = vmatpush.msra.mxu0 %v283_v7  ;;  %447 = vmatpush.msra.mxu2 %v283_v7 }
  0x18   : > { %314 = vmatpush.msra.mxu0 %v282_v8  ;;  %448 = vmatpush.msra.mxu2 %v282_v8 }
  0x1a   : > { %315 = vmatpush.msra.mxu0 %v281_v9  ;;  %449 = vmatpush.msra.mxu2 %v281_v9 }
  0x1b   : > { %435 = vmatmul.msk.f32.vlgmr.msra.gmra.mxu0 %vm293_vm1, %v279_v10  ;;  %436 = vmatmul.msk.f32.vlgmr.msra.gmra.mxu2 %vm293_vm1, %v280_v11 }
  0x98   : > { %v317_v16 = vpop.f32.mrf.mxu0 }
  0x99   : > { %v318_v17 = vadd.f32 %v459_v15, %v317_v16 }
  0x9b   : > { %v323_v18 = vmax.f32 %v318_v17, 0.0 }
  0x9d   : > { %437 = vmatmul.msk.f32.vlgmr.msra.gmra.mxu1 %vm333_vm2, %v323_v18 }
  0x9e   : > { %v320_v19 = vpop.f32.mrf.mxu2 }
  0x9f   : > { %v321_v20 = vadd.f32 %v459_v15, %v320_v19 }
  0xa1   : > { %v324_v21 = vmax.f32 %v321_v20, 0.0 }
  0xa5   : > { %438 = vmatmul.msk.f32.gmra.mxu1 %vm333_vm2, %v324_v21 }
 0x11a   : > { %v357_v23 = vpop.f32.mrf.mxu1 }
 0x11b   : > { %v358_v25 = vadd.f32 %v460_v22, %v357_v23 }
 0x11d   : > { %v365_v26 = vadd.f32 %v363_v24, %v358_v25 }
 0x11f   : > { %370 = vst.msk [vmem:[%s541_s20 + $0x4] sm:$0xff] %vm333_vm2, %v365_v26 }
 0x122   : > { %v360_v27 = vpop.f32.mrf.mxu1 }
 0x123   : > { %v361_v29 = vadd.f32 %v460_v22, %v360_v27 }
 0x125   : > { %v366_v30 = vadd.f32 %v364_v28, %v361_v29 }
 0x127   : > { %371 = vst.msk [vmem:[%s541_s20 + $0xc] sm:$0xff] %vm333_vm2, %v366_v30 }
 0x128 PF: > { %s17_s24 = sadd.s32 1, %s467_s24  }
 0x129   : > { %p14_p4 = scmp.ge.s32.totalorder %s17_s24, 4  }
 0x12b   :  { %16 = sbr.rel (!%p14_p4) target bundleno = 1 (0x1), region = 78 }

</bundles_post_ra>
